<compile_context>
chip_gen: v7x
topology: tpu7x:2x2x1
jax: 0.10.0
libtpu: 0.0.40
codegen_flags: <defaults>
</compile_context>

<pallas_src>
import functools

import numpy as np
import jax
import jax.numpy as jnp
from jax.experimental import pallas as pl
from jax.experimental.pallas import tpu as pltpu


# ---------------------------------------------------------------------------
# Kernel body: window partition with the (-shift, -shift) cyclic roll fused in.
# ---------------------------------------------------------------------------
def _load_cols(ref, r0, nrows, c0, ws, W):
    """Load (nrows, ws, C) = ref[0, r0:r0+nrows, (c0 .. c0+ws) mod W, :].  All indices static."""
    if c0 + ws <= W:
        return ref[0, r0:r0 + nrows, c0:c0 + ws, :]
    n1 = W - c0                                   # columns before the wrap
    left = ref[0, r0:r0 + nrows, c0:W, :]
    right = ref[0, r0:r0 + nrows, 0:ws - n1, :]
    return jnp.concatenate([left, right], axis=1)


def _window_kernel(*refs, k, ws, shift, Wb, W):
    # refs:
    #   g_ref:  (1, k*ws, W, C)  -- k un-shifted window-row strips (auto-pipelined)
    #   e_ref:  (1, shift, W, C) -- the `shift` rows following this group, modulo H
    #                               (only present when shift > 0)
    #   out_ref:(k*Wb, ws, ws, C)-- the k*Wb windows of the shifted image for this group
    if shift:
        g_ref, e_ref, out_ref = refs
    else:
        g_ref, out_ref = refs

    for j in range(k):                    # static unroll: strips in this group
        for wi in range(Wb):              # static unroll: windows in a strip
            idx = j * Wb + wi
            c0 = wi * ws + shift          # W-axis roll folded into the column offset
            if shift:
                # Top (ws - shift) rows come from this strip, bottom `shift` rows from the
                # next strip (H-axis roll); the last strip of the group uses the overlap block.
                top = _load_cols(g_ref, j * ws + shift, ws - shift, c0, ws, W)
                if j < k - 1:
                    bot = _load_cols(g_ref, (j + 1) * ws, shift, c0, ws, W)
                else:
                    bot = _load_cols(e_ref, 0, shift, c0, ws, W)
                out_ref[idx, 0:ws - shift] = top
                out_ref[idx, ws - shift:ws] = bot
            else:
                out_ref[idx] = _load_cols(g_ref, j * ws, ws, c0, ws, W)


# ---------------------------------------------------------------------------
# Tiling heuristics (per-generation VMEM budget + step amortization).
# ---------------------------------------------------------------------------
def _vmem_budget_bytes():
    try:
        cap = int(pltpu.get_tpu_info().vmem_capacity_bytes)
    except Exception:
        cap = 64 * 2**20                  # assume the smallest (v7x) if the query fails
    return (3 * cap) // 4                 # ~48 MiB on v7x, ~96 MiB on v5e/v6e


def _pick_strips_per_step(B, Hb, strip_bytes, extra_bytes, budget):
    """Largest divisor k of Hb such that the double-buffered blocks fit the VMEM budget,
    keeping >= 2 grid steps (v7x megacore) and stopping once blocks are ~1 MiB (enough to
    amortize the ~0.35us/step fixed cost)."""
    best = 1
    for k in range(1, Hb + 1):
        if Hb % k:
            continue
        usage = 2 * (2 * k * strip_bytes + extra_bytes)   # in-group + out blocks, double-buffered
        steps = B * (Hb // k)
        if usage > budget:
            break
        if steps < 2 and B * Hb >= 2:
            break
        best = k
        if k * strip_bytes >= (1 << 20):
            break
    return best


# ---------------------------------------------------------------------------
# Pallas window partition (roll fused).
# ---------------------------------------------------------------------------
def _window_partition_pallas(x, wsize, shift):
    """x: (B, H, W, C), *un-shifted*.  Returns windows of the (-shift, -shift)-rolled image,
    shape (B*nW, wsize*wsize, C).  The roll is fused into the gather (no extra HBM pass)."""
    B, H, W, C = x.shape
    ws = wsize
    Hb, Wb = H // ws, W // ws
    nW = Hb * Wb
    itemsize = jnp.dtype(x.dtype).itemsize

    if shift:
        assert 0 < shift < ws and H % shift == 0

    strip_bytes = ws * W * C * itemsize            # one window-row strip (in bytes == out bytes)
    extra_bytes = max(shift, 1) * W * C * itemsize
    budget = _vmem_budget_bytes()
    k = _pick_strips_per_step(B, Hb, strip_bytes, extra_bytes, budget)
    G = Hb // k                                    # grid extent along the strip-group axis

    kernel = functools.partial(_window_kernel, k=k, ws=ws, shift=shift, Wb=Wb, W=W)

    in_specs = [pl.BlockSpec((1, k * ws, W, C), lambda b, g: (b, g, 0, 0))]
    operands = [x]
    if shift:
        nb = (k * ws) // shift                     # group size in units of `shift` rows
        def _extra_map(b, g, _nb=nb, _G=G):
            # Rows following this group, wrapping to row 0 for the last group (H-axis roll).
            return (b, jnp.where(g == _G - 1, 0, (g + 1) * _nb), 0, 0)
        in_specs.append(pl.BlockSpec((1, shift, W, C), _extra_map))
        operands.append(x)

    in_bytes = B * (H + (G * shift if shift else 0)) * W * C * itemsize
    out_bytes = B * H * W * C * itemsize

    out = pl.pallas_call(
        kernel,
        out_shape=jax.ShapeDtypeStruct((B * nW, ws, ws, C), x.dtype),
        grid=(B, G),
        in_specs=in_specs,
        out_specs=pl.BlockSpec((k * Wb, ws, ws, C), lambda b, g: (b * G + g, 0, 0, 0)),
        compiler_params=pltpu.CompilerParams(
            dimension_semantics=("parallel", "parallel"),
            vmem_limit_bytes=int(budget),
        ),
        cost_estimate=pl.CostEstimate(
            flops=0, transcendentals=0, bytes_accessed=int(in_bytes + out_bytes),
        ),
    )(*operands)

    # Free contiguous reshape on the HBM result: (B*nW, ws, ws, C) -> (B*nW, ws*ws, C).
    return out.reshape(B * nW, ws * ws, C)


def _window_partition_xla(x, wsize):
    """Lane-sparse fallback (wsize*C < 128): plain XLA reshape/transpose beats masked stores."""
    B, H, W, C = x.shape
    x = x.reshape(B, H // wsize, wsize, W // wsize, wsize, C)
    return x.transpose(0, 1, 3, 2, 4, 5).reshape(-1, wsize * wsize, C)


# ---------------------------------------------------------------------------
# Attention mask: compile-time constant, computed host-side (no kernel launch).
# ---------------------------------------------------------------------------
def _attention_partition(H, W, wsize):
    att = np.zeros((H, W), dtype=np.int32)
    slices = [slice(0, -wsize), slice(-wsize, -wsize // 2), slice(-wsize // 2, None)]
    idx = 0
    for hs in slices:
        for ws_ in slices:
            att[hs, ws_] = idx
            idx += 1
    att = att.reshape(H // wsize, wsize, W // wsize, wsize).transpose(0, 2, 1, 3)
    return att.reshape(-1, wsize * wsize)


def _mask_host(H, W, wsize):
    attw = _attention_partition(H, W, wsize)       # int32 comparison (exact)
    same = attw[:, None, :] == attw[:, :, None]
    return np.where(same, 0.0, -100.0).astype(np.float32)


# ---------------------------------------------------------------------------
# Forward (matches CycShftWndwPartition.forward)
# ---------------------------------------------------------------------------
@functools.partial(jax.jit, static_argnums=(1, 2))
def _forward_impl(cvrt_img, window_size, cyc_shift):
    B, H, W, C = cvrt_img.shape
    assert H % window_size == 0 and W % window_size == 0, "H, W must be multiples of wsize"
    S = window_size * window_size
    nW = (H * W) // S

    # NOTE: the PyTorch module hardcodes torch.roll(shifts=(-8 // 2, -8 // 2)) regardless of
    # window_size (flagged in the review); mirrored here deliberately.
    shift = (8 // 2) if cyc_shift else 0

    if cyc_shift:
        mask = jnp.asarray(_mask_host(H, W, window_size))     # compile-time constant
    else:
        mask = jnp.zeros((nW, S, S), jnp.float32)

    if window_size * C >= 128 and shift < window_size:
        windows = _window_partition_pallas(cvrt_img, window_size, shift)
    else:
        # Lane-sparse channel counts (or unusual shift/window combos): XLA fallback.
        x = jnp.roll(cvrt_img, (-shift, -shift), axis=(1, 2)) if shift else cvrt_img
        windows = _window_partition_xla(x, window_size)
    return windows, mask


def cyc_shft_wndw_partition(cvrt_img, window_size, cyc_shift):
    """Matches CycShftWndwPartition.forward: returns (windows, mask, (B, H, W, C))."""
    B, H, W, C = cvrt_img.shape
    windows, mask = _forward_impl(cvrt_img, window_size, cyc_shift)
    return windows, mask, (B, H, W, C)


# ---------------------------------------------------------------------------
# Pure numpy reference (transcription of the PyTorch forward)
# ---------------------------------------------------------------------------
def _ref_forward(x, window_size, cyc_shift):
    x = np.asarray(x)
    B, H, W, C = x.shape
    ws = window_size
    if cyc_shift:
        xs = np.roll(x, shift=(-8 // 2, -8 // 2), axis=(1, 2))
        attw = _attention_partition(H, W, ws).astype(np.float32)
        diff = attw[:, None, :] - attw[:, :, None]
        mask = np.where(diff == 0, 0.0, -100.0).astype(np.float32)
    else:
        xs = x
        mask = np.zeros((H * W // (ws * ws), ws * ws, ws * ws), np.float32)
    xw = xs.reshape(B, H // ws, ws, W // ws, ws, C).transpose(0, 1, 3, 2, 4, 5)
    return xw.reshape(-1, ws * ws, C), mask


if __name__ == "__main__":
    key = jax.random.PRNGKey(0)
    B, H, W = 2, 16, 16
    window_size = 8

    # C=180 is DeepFE's production channel width (exercises the fused-roll Pallas path);
    # C=4 exercises the lane-sparse XLA fallback recommended by the review.
    for C in (180, 4):
        x = jax.random.normal(jax.random.fold_in(key, C), (B, H, W, C), dtype=jnp.float32)
        for cyc in (True, False):
            windows, mask, shape_info = cyc_shft_wndw_partition(x, window_size, cyc)
            jax.block_until_ready((windows, mask))

            ref_w, ref_m = _ref_forward(x, window_size, cyc)
            assert windows.shape == ref_w.shape, (windows.shape, ref_w.shape)
            assert mask.shape == ref_m.shape, (mask.shape, ref_m.shape)
            np.testing.assert_allclose(np.asarray(windows), ref_w, rtol=0, atol=0)
            np.testing.assert_allclose(np.asarray(mask), ref_m, rtol=0, atol=0)
            assert shape_info == (B, H, W, C)

    print("KERNEL_OK")
</pallas_src>

<mosaic_0001>
module attributes {stable_mosaic.version = 11 : i64} {
  func.func @_window_kernel(%arg0: i32, %arg1: i32, %arg2: memref<1x16x16x180xf32, #tpu.memory_space<vmem>>, %arg3: memref<1x4x16x180xf32, #tpu.memory_space<vmem>>, %arg4: memref<4x8x8x180xf32, #tpu.memory_space<vmem>>) attributes {dimension_semantics = [#tpu.dimension_semantics<parallel>, #tpu.dimension_semantics<parallel>], iteration_bounds = array<i64: 2, 1>, scalar_prefetch = 0 : i64, scratch_operands = 0 : i64, tpu.core_type = #tpu.core_type<tc>, window_params = [{transform_indices = @transform_0, window_bounds = array<i64: 1, 16, 16, 180>}, {transform_indices = @transform_1, window_bounds = array<i64: 1, 4, 16, 180>}, {transform_indices = @transform_2, window_bounds = array<i64: 4, 8, 8, 180>}]} {
    %c0 = arith.constant 0 : index
    %c4 = arith.constant 4 : index
    %c4_0 = arith.constant 4 : index
    %c0_1 = arith.constant 0 : index
    %0 = vector.load %arg2[%c0, %c4, %c4_0, %c0_1] : memref<1x16x16x180xf32, #tpu.memory_space<vmem>>, vector<1x4x8x180xf32>
    %1 = vector.shape_cast %0 : vector<1x4x8x180xf32> to vector<4x8x180xf32>
    %c0_2 = arith.constant 0 : index
    %c8 = arith.constant 8 : index
    %c4_3 = arith.constant 4 : index
    %c0_4 = arith.constant 0 : index
    %2 = vector.load %arg2[%c0_2, %c8, %c4_3, %c0_4] : memref<1x16x16x180xf32, #tpu.memory_space<vmem>>, vector<1x4x8x180xf32>
    %3 = vector.shape_cast %2 : vector<1x4x8x180xf32> to vector<4x8x180xf32>
    %c0_5 = arith.constant 0 : index
    %c0_6 = arith.constant 0 : index
    %c0_7 = arith.constant 0 : index
    %c0_8 = arith.constant 0 : index
    %4 = vector.load %arg4[%c0_5, %c0_6, %c0_7, %c0_8] : memref<4x8x8x180xf32, #tpu.memory_space<vmem>>, vector<1x4x8x180xf32>
    %5 = vector.shape_cast %4 : vector<1x4x8x180xf32> to vector<4x8x180xf32>
    %6 = vector.shape_cast %1 : vector<4x8x180xf32> to vector<1x4x8x180xf32>
    tpu.vector_store %arg4[%c0_5, %c0_6, %c0_7, %c0_8], %6 {strides = array<i32>} : memref<4x8x8x180xf32, #tpu.memory_space<vmem>>, vector<1x4x8x180xf32>,
    %c0_9 = arith.constant 0 : index
    %c4_10 = arith.constant 4 : index
    %c0_11 = arith.constant 0 : index
    %c0_12 = arith.constant 0 : index
    %7 = vector.load %arg4[%c0_9, %c4_10, %c0_11, %c0_12] : memref<4x8x8x180xf32, #tpu.memory_space<vmem>>, vector<1x4x8x180xf32>
    %8 = vector.shape_cast %7 : vector<1x4x8x180xf32> to vector<4x8x180xf32>
    %9 = vector.shape_cast %3 : vector<4x8x180xf32> to vector<1x4x8x180xf32>
    tpu.vector_store %arg4[%c0_9, %c4_10, %c0_11, %c0_12], %9 {strides = array<i32>} : memref<4x8x8x180xf32, #tpu.memory_space<vmem>>, vector<1x4x8x180xf32>,
    %c0_13 = arith.constant 0 : index
    %c4_14 = arith.constant 4 : index
    %c12 = arith.constant 12 : index
    %c0_15 = arith.constant 0 : index
    %10 = vector.load %arg2[%c0_13, %c4_14, %c12, %c0_15] : memref<1x16x16x180xf32, #tpu.memory_space<vmem>>, vector<1x4x4x180xf32>
    %11 = vector.shape_cast %10 : vector<1x4x4x180xf32> to vector<4x4x180xf32>
    %c0_16 = arith.constant 0 : index
    %c4_17 = arith.constant 4 : index
    %c0_18 = arith.constant 0 : index
    %c0_19 = arith.constant 0 : index
    %12 = vector.load %arg2[%c0_16, %c4_17, %c0_18, %c0_19] : memref<1x16x16x180xf32, #tpu.memory_space<vmem>>, vector<1x4x4x180xf32>
    %13 = vector.shape_cast %12 : vector<1x4x4x180xf32> to vector<4x4x180xf32>
    %14 = tpu.concatenate %11, %13 in 1 : vector<4x4x180xf32>, vector<4x4x180xf32> -> vector<4x8x180xf32>
    %c0_20 = arith.constant 0 : index
    %c8_21 = arith.constant 8 : index
    %c12_22 = arith.constant 12 : index
    %c0_23 = arith.constant 0 : index
    %15 = vector.load %arg2[%c0_20, %c8_21, %c12_22, %c0_23] : memref<1x16x16x180xf32, #tpu.memory_space<vmem>>, vector<1x4x4x180xf32>
    %16 = vector.shape_cast %15 : vector<1x4x4x180xf32> to vector<4x4x180xf32>
    %c0_24 = arith.constant 0 : index
    %c8_25 = arith.constant 8 : index
    %c0_26 = arith.constant 0 : index
    %c0_27 = arith.constant 0 : index
    %17 = vector.load %arg2[%c0_24, %c8_25, %c0_26, %c0_27] : memref<1x16x16x180xf32, #tpu.memory_space<vmem>>, vector<1x4x4x180xf32>
    %18 = vector.shape_cast %17 : vector<1x4x4x180xf32> to vector<4x4x180xf32>
    %19 = tpu.concatenate %16, %18 in 1 : vector<4x4x180xf32>, vector<4x4x180xf32> -> vector<4x8x180xf32>
    %c1 = arith.constant 1 : index
    %c0_28 = arith.constant 0 : index
    %c0_29 = arith.constant 0 : index
    %c0_30 = arith.constant 0 : index
    %20 = vector.load %arg4[%c1, %c0_28, %c0_29, %c0_30] : memref<4x8x8x180xf32, #tpu.memory_space<vmem>>, vector<1x4x8x180xf32>
    %21 = vector.shape_cast %20 : vector<1x4x8x180xf32> to vector<4x8x180xf32>
    %22 = vector.shape_cast %14 : vector<4x8x180xf32> to vector<1x4x8x180xf32>
    tpu.vector_store %arg4[%c1, %c0_28, %c0_29, %c0_30], %22 {strides = array<i32>} : memref<4x8x8x180xf32, #tpu.memory_space<vmem>>, vector<1x4x8x180xf32>,
    %c1_31 = arith.constant 1 : index
    %c4_32 = arith.constant 4 : index
    %c0_33 = arith.constant 0 : index
    %c0_34 = arith.constant 0 : index
    %23 = vector.load %arg4[%c1_31, %c4_32, %c0_33, %c0_34] : memref<4x8x8x180xf32, #tpu.memory_space<vmem>>, vector<1x4x8x180xf32>
    %24 = vector.shape_cast %23 : vector<1x4x8x180xf32> to vector<4x8x180xf32>
    %25 = vector.shape_cast %19 : vector<4x8x180xf32> to vector<1x4x8x180xf32>
    tpu.vector_store %arg4[%c1_31, %c4_32, %c0_33, %c0_34], %25 {strides = array<i32>} : memref<4x8x8x180xf32, #tpu.memory_space<vmem>>, vector<1x4x8x180xf32>,
    %c0_35 = arith.constant 0 : index
    %c12_36 = arith.constant 12 : index
    %c4_37 = arith.constant 4 : index
    %c0_38 = arith.constant 0 : index
    %26 = vector.load %arg2[%c0_35, %c12_36, %c4_37, %c0_38] : memref<1x16x16x180xf32, #tpu.memory_space<vmem>>, vector<1x4x8x180xf32>
    %27 = vector.shape_cast %26 : vector<1x4x8x180xf32> to vector<4x8x180xf32>
    %c0_39 = arith.constant 0 : index
    %c0_40 = arith.constant 0 : index
    %c4_41 = arith.constant 4 : index
    %c0_42 = arith.constant 0 : index
    %28 = vector.load %arg3[%c0_39, %c0_40, %c4_41, %c0_42] : memref<1x4x16x180xf32, #tpu.memory_space<vmem>>, vector<1x4x8x180xf32>
    %29 = vector.shape_cast %28 : vector<1x4x8x180xf32> to vector<4x8x180xf32>
    %c2 = arith.constant 2 : index
    %c0_43 = arith.constant 0 : index
    %c0_44 = arith.constant 0 : index
    %c0_45 = arith.constant 0 : index
    %30 = vector.load %arg4[%c2, %c0_43, %c0_44, %c0_45] : memref<4x8x8x180xf32, #tpu.memory_space<vmem>>, vector<1x4x8x180xf32>
    %31 = vector.shape_cast %30 : vector<1x4x8x180xf32> to vector<4x8x180xf32>
    %32 = vector.shape_cast %27 : vector<4x8x180xf32> to vector<1x4x8x180xf32>
    tpu.vector_store %arg4[%c2, %c0_43, %c0_44, %c0_45], %32 {strides = array<i32>} : memref<4x8x8x180xf32, #tpu.memory_space<vmem>>, vector<1x4x8x180xf32>,
    %c2_46 = arith.constant 2 : index
    %c4_47 = arith.constant 4 : index
    %c0_48 = arith.constant 0 : index
    %c0_49 = arith.constant 0 : index
    %33 = vector.load %arg4[%c2_46, %c4_47, %c0_48, %c0_49] : memref<4x8x8x180xf32, #tpu.memory_space<vmem>>, vector<1x4x8x180xf32>
    %34 = vector.shape_cast %33 : vector<1x4x8x180xf32> to vector<4x8x180xf32>
    %35 = vector.shape_cast %29 : vector<4x8x180xf32> to vector<1x4x8x180xf32>
    tpu.vector_store %arg4[%c2_46, %c4_47, %c0_48, %c0_49], %35 {strides = array<i32>} : memref<4x8x8x180xf32, #tpu.memory_space<vmem>>, vector<1x4x8x180xf32>,
    %c0_50 = arith.constant 0 : index
    %c12_51 = arith.constant 12 : index
    %c12_52 = arith.constant 12 : index
    %c0_53 = arith.constant 0 : index
    %36 = vector.load %arg2[%c0_50, %c12_51, %c12_52, %c0_53] : memref<1x16x16x180xf32, #tpu.memory_space<vmem>>, vector<1x4x4x180xf32>
    %37 = vector.shape_cast %36 : vector<1x4x4x180xf32> to vector<4x4x180xf32>
    %c0_54 = arith.constant 0 : index
    %c12_55 = arith.constant 12 : index
    %c0_56 = arith.constant 0 : index
    %c0_57 = arith.constant 0 : index
    %38 = vector.load %arg2[%c0_54, %c12_55, %c0_56, %c0_57] : memref<1x16x16x180xf32, #tpu.memory_space<vmem>>, vector<1x4x4x180xf32>
    %39 = vector.shape_cast %38 : vector<1x4x4x180xf32> to vector<4x4x180xf32>
    %40 = tpu.concatenate %37, %39 in 1 : vector<4x4x180xf32>, vector<4x4x180xf32> -> vector<4x8x180xf32>
    %c0_58 = arith.constant 0 : index
    %c0_59 = arith.constant 0 : index
    %c12_60 = arith.constant 12 : index
    %c0_61 = arith.constant 0 : index
    %41 = vector.load %arg3[%c0_58, %c0_59, %c12_60, %c0_61] : memref<1x4x16x180xf32, #tpu.memory_space<vmem>>, vector<1x4x4x180xf32>
    %42 = vector.shape_cast %41 : vector<1x4x4x180xf32> to vector<4x4x180xf32>
    %c0_62 = arith.constant 0 : index
    %c0_63 = arith.constant 0 : index
    %c0_64 = arith.constant 0 : index
    %c0_65 = arith.constant 0 : index
    %43 = vector.load %arg3[%c0_62, %c0_63, %c0_64, %c0_65] : memref<1x4x16x180xf32, #tpu.memory_space<vmem>>, vector<1x4x4x180xf32>
    %44 = vector.shape_cast %43 : vector<1x4x4x180xf32> to vector<4x4x180xf32>
    %45 = tpu.concatenate %42, %44 in 1 : vector<4x4x180xf32>, vector<4x4x180xf32> -> vector<4x8x180xf32>
    %c3 = arith.constant 3 : index
    %c0_66 = arith.constant 0 : index
    %c0_67 = arith.constant 0 : index
    %c0_68 = arith.constant 0 : index
    %46 = vector.load %arg4[%c3, %c0_66, %c0_67, %c0_68] : memref<4x8x8x180xf32, #tpu.memory_space<vmem>>, vector<1x4x8x180xf32>
    %47 = vector.shape_cast %46 : vector<1x4x8x180xf32> to vector<4x8x180xf32>
    %48 = vector.shape_cast %40 : vector<4x8x180xf32> to vector<1x4x8x180xf32>
    tpu.vector_store %arg4[%c3, %c0_66, %c0_67, %c0_68], %48 {strides = array<i32>} : memref<4x8x8x180xf32, #tpu.memory_space<vmem>>, vector<1x4x8x180xf32>,
    %c3_69 = arith.constant 3 : index
    %c4_70 = arith.constant 4 : index
    %c0_71 = arith.constant 0 : index
    %c0_72 = arith.constant 0 : index
    %49 = vector.load %arg4[%c3_69, %c4_70, %c0_71, %c0_72] : memref<4x8x8x180xf32, #tpu.memory_space<vmem>>, vector<1x4x8x180xf32>
    %50 = vector.shape_cast %49 : vector<1x4x8x180xf32> to vector<4x8x180xf32>
    %51 = vector.shape_cast %45 : vector<4x8x180xf32> to vector<1x4x8x180xf32>
    tpu.vector_store %arg4[%c3_69, %c4_70, %c0_71, %c0_72], %51 {strides = array<i32>} : memref<4x8x8x180xf32, #tpu.memory_space<vmem>>, vector<1x4x8x180xf32>,
    return
  }
  func.func @transform_0(%arg0: i32, %arg1: i32) -> (i32, i32, i32, i32) {
    %c0_i32 = arith.constant 0 : i32
    %c0_i32_0 = arith.constant 0 : i32
    %c0_i32_1 = arith.constant 0 : i32
    return %arg0, %arg1, %c0_i32, %c0_i32_0 : i32, i32, i32, i32
  }
  func.func @transform_1(%arg0: i32, %arg1: i32) -> (i32, i32, i32, i32) {
    %c0_i32 = arith.constant 0 : i32
    %0 = arith.cmpi eq, %arg1, %c0_i32 : i32
    %c1_i32 = arith.constant 1 : i32
    %1 = arith.addi %arg1, %c1_i32 : i32
    %c4_i32 = arith.constant 4 : i32
    %2 = arith.muli %1, %c4_i32 : i32
    %c0_i32_0 = arith.constant 0 : i32
    %3 = arith.select %0, %c0_i32_0, %2 : i32
    %c0_i32_1 = arith.constant 0 : i32
    %c0_i32_2 = arith.constant 0 : i32
    %c0_i32_3 = arith.constant 0 : i32
    return %arg0, %3, %c0_i32_1, %c0_i32_2 : i32, i32, i32, i32
  }
  func.func @transform_2(%arg0: i32, %arg1: i32) -> (i32, i32, i32, i32) {
    %c1_i32 = arith.constant 1 : i32
    %0 = arith.muli %arg0, %c1_i32 : i32
    %1 = arith.addi %0, %arg1 : i32
    %c0_i32 = arith.constant 0 : i32
    %c0_i32_0 = arith.constant 0 : i32
    %c0_i32_1 = arith.constant 0 : i32
    %c0_i32_2 = arith.constant 0 : i32
    return %1, %c0_i32, %c0_i32_0, %c0_i32_1 : i32, i32, i32, i32
  }
}

</mosaic_0001>

<bundles_post_ra>
// kernel: _forward_impl.1
= control target key start
LH: loop header
LB: loop body
LE: loop exit
PB: predicated region body
PF: predicated region fallthrough
CT: control target
= control target key end

     0   :  { %7 = vsyncpa [#allocation3], 0  ;;  %s1943_s0 = inlined_call_operand.hbm [shape: f32[2,16,16,180], index: 0, kind: input, shape index: {}, may-alias: {0,1}]   ;;  %s1944_s1 = inlined_call_operand.hbm [shape: f32[2,16,16,180], index: 1, kind: input, shape index: {}, may-alias: {0,1}]   ;;  %s1945_s2 = inlined_call_operand.hbm [shape: f32[8,8,8,180], index: 2, kind: output, shape index: {}]  }
   0x1   :  { %9 = vsyncpa [#allocation3 + $0x1], 0 }
   0x2   :  { %10 = vsyncpa [#allocation6], 0 }
   0x3   :  { %12 = vsyncpa [#allocation6 + $0x1], 0 }
   0x4   :  { %13 = vsyncpa [#allocation4], 0 }
   0x5   :  { %15 = vsyncpa [#allocation4 + $0x1], 0  ;;  %s1410_s9 = smov 0   ;;  %s1412_s10 = smov 0  }
   0x6   :  { %s1414_s11 = smov 0   ;;  %s1416_s12 = smov 0  }
   0x7   :  { %s1418_s13 = smov 0   ;;  %s1420_s14 = smov 0  }
   0x8 LB: > { %s993_s15 = sadd.s32 4294967295, %s1386_s14   ;;  %s994_s16 = sadd.s32 4294967294, %s1386_s14   ;;  %s1386_s14 = sphi %s1420_s14, %s21_s14   ;;  %s1382_s13 = sphi %s1418_s13, %s1963_s13   ;;  %s1378_s12 = sphi %s1416_s12, %s1962_s12   ;;  %s1374_s11 = sphi %s1414_s11, %s1961_s11   ;;  %s1370_s10 = sphi %s1412_s10, %s1960_s10   ;;  %s1366_s9 = sphi %s1410_s9, %s1959_s9  }
   0x9   : > { %s33_s17 = sadd.s32 1, %s1382_s13  ;;  %s42_s18 = sadd.s32 1, %s1374_s11 }
   0xa   : > { %p35_p0 = scmp.ge.s32.totalorder %s33_s17, 2  ;;  %p49_p1 = scmp.ne.s32.totalorder %s1374_s11, %s1370_s10 }
   0xb   : > { %p50_p2 = scmp.eq.s32.totalorder %s1386_s14, 0  ;;  %p55_p3 = scmp.ne.s32.totalorder %s1370_s10, %s1366_s9 }
   0xc   : > { %s1965_s17 = smov (%p35_p0, %s33_s17), 0  ;;  %p56_p5 = scmp.eq.s32.totalorder %s993_s15, 0 }
   0xd   : > { %p1451_p4 = por %p50_p2, %p49_p1  ;;  %s37_s20 = ssub.s32 %s1382_s13, %s1965_s17 }
   0xe   : > { %p117_p6 = scmp.eq.s32.totalorder %s993_s15, 1  ;;  %p40_p7 = scmp.eq.s32.totalorder %s37_s20, 0 }
   0xf   : > { %p1457_p8 = por %p56_p5, %p55_p3  ;;  %p123_p10 = scmp.eq.s32.totalorder %s994_s16, 1 }
  0x10   : > { %p1461_p9 = por %p117_p6, %p49_p1  ;;  %p1186_p13 = scmp.lt.s32.totalorder %s1386_s14, 2 }
  0x11   : > { %s1949_s21 = scalar_select %p1457_p8, 1, 0 }
  0x12   : > { %s1950_s22 = scalar_select %p1461_p9, 1, 0 }
  0x13   : > { %s1466_s23 = scalar_select %p40_p7, %s1374_s11, %s42_s18  }
  0x14   : > { %p1468_p11 = por %p123_p10, %p55_p3  ;;  %s1475_s25 = sand.u32 1, %s1374_s11  }
  0x15   : > { %s997_s26 = sshll.u32 %s1475_s25, 9  ;;  %s1165_s27 = sshll.u32 %s1382_s13, 13 }
  0x16   : > { %s1951_s24 = scalar_select %p1468_p11, 1, 0 }
  0x17   : > { %s1484_s30 = scalar_lea.hbm %s1943_s0, %s1165_s27  ;;  %s147_s3 = scalar_lea.vmem [#allocation2], %s997_s26 }
  0x18   : > { %s157_s4 = sshll.u32 %s147_s3, 4  ;;  %p1490_p0 = pnand %p1186_p13, %p1451_p4  ;;  %s1486_s4 = int_to_ptr.vmem [resolvable:$true] %s157_s4 }
  0x19   : > { %s144_s6 = scalar_lea.sflag [#allocation3], %s1475_s25  ;;  %s1240_s7 = scalar_lea.hbm %s1484_s30, 8192 }
  0x1a   : > { %p1241_p2 = scmp.ne.s32.totalorder %s1484_s30, %s1240_s7  ;;  %p1242_p3 = pneg %p1490_p0 }
  0x1b   : > { %s1245_s16 = scalar_lea.hbm %s1943_s0, 16384  ;;  %p1246_p4 = scmp.lt.u32.totalorder %s1484_s30, %s1943_s0 }
  0x1c   : > { %p1243_p5 = pnand %p1242_p3, %p1241_p2  ;;  %p1247_p7 = scmp.lt.u32.totalorder %s1245_s16, %s1240_s7 }
  0x1d   : > { %p1249_p13 = scmp.lt.u32.totalorder %s1240_s7, %s1484_s30 }
  0x1e   : > { %p1244_p6 = pneg %p1243_p5  ;;  %p1248_p10 = por %p1247_p7, %p1246_p4 }
  0x20   : > { %p1250_p12 = por %p1249_p13, %p1248_p10 }
  0x22   : > { %p1251_p1 = pnand %p1250_p12, %p1244_p6 }
  0x24   : > { %1254 = shalt.err (!%p1251_p1)
}
  0x25   : > { %s1255_s20 = scalar_lea.vmem %s1486_s4, 8192  ;;  %s1388_s26 = smov [#allocation2]  }
  0x26   : > { %p1256_p2 = scmp.ne.s32.totalorder %s1486_s4, %s1255_s20  ;;  %s1260_s28 = sshll.u32 %s1388_s26, 4  ;;  %s1261_s28 = int_to_ptr.vmem [resolvable:$false] %s1260_s28 }
  0x27   : > { %s1262_s29 = scalar_lea.vmem %s1261_s28, 16384  ;;  %p1263_p9 = scmp.lt.s32.totalorder %s1486_s4, %s1261_s28 }
  0x28   : > { %p1258_p5 = pnand %p1256_p2, %p1242_p3  ;;  %p1264_p4 = scmp.lt.s32.totalorder %s1262_s29, %s1255_s20 }
  0x2a   : > { %p1259_p11 = pneg %p1258_p5  ;;  %p1265_p7 = por %p1264_p4, %p1263_p9 }
  0x2c   : > { %p1266_p10 = pnand %p1265_p7, %p1259_p11 }
  0x2e   : > { %1269 = shalt.err (!%p1266_p10)
}
  0x2f   : > { %s1389_s3 = smov 256   ;;  %s1390_s7 = smov 16  }
  0x30   : > { %1178 = dma.hbm_to_vmem [thread:$0]  (!%p1490_p0), %s1484_s30, 8192, %s1486_s4, %s144_s6, %s1389_s3, %s1389_s3, %s1390_s7  }
  0x31   : > { %p193_p9 = scmp.lt.s32.totalorder %s1386_s14, 3  ;;  %s1000_s8 = sshll.u32 %s1475_s25, 7 }
  0x32   : > { %s1533_s18 = scalar_lea.hbm %s1944_s1, %s1165_s27  ;;  %p1953_p11 = scmp.ge.s32.totalorder %s1386_s14, 1 }
  0x33   : > { %s171_s20 = scalar_lea.vmem [#allocation5], %s1000_s8  ;;  %s168_s30 = scalar_lea.sflag [#allocation6], %s1475_s25 }
  0x34   : > { %p1537_p12 = pnand %p1953_p11, %p193_p9  ;;  %s185_s26 = sshll.u32 %s171_s20, 4  ;;  %s1541_s26 = int_to_ptr.vmem [resolvable:$true] %s185_s26 }
  0x35   : > { %s1270_s4 = scalar_lea.hbm %s1533_s18, 2048  ;;  %s1275_s28 = scalar_lea.hbm %s1944_s1, 16384 }
  0x36   : > { %p1271_p1 = scmp.ne.s32.totalorder %s1533_s18, %s1270_s4  ;;  %p1276_p2 = scmp.lt.u32.totalorder %s1533_s18, %s1944_s1 }
  0x37   : > { %p1277_p5 = scmp.lt.u32.totalorder %s1275_s28, %s1270_s4  ;;  %p1279_p7 = scmp.lt.u32.totalorder %s1270_s4, %s1533_s18 }
  0x38   : > { %p1273_p6 = pnand %p1271_p1, %p1242_p3 }
  0x39   : > { %p1278_p4 = por %p1277_p5, %p1276_p2 }
  0x3a   : > { %p1274_p13 = pneg %p1273_p6 }
  0x3b   : > { %p1280_p10 = por %p1279_p7, %p1278_p4 }
  0x3d   : > { %p1281_p9 = pnand %p1280_p10, %p1274_p13 }
  0x3f   : > { %1284 = shalt.err (!%p1281_p9)
}
  0x40   : > { %s1285_s8 = scalar_lea.vmem %s1541_s26, 2048  ;;  %s1391_s16 = smov [#allocation5]  }
  0x41   : > { %p1286_p11 = scmp.ne.s32.totalorder %s1541_s26, %s1285_s8  ;;  %s1290_s20 = sshll.u32 %s1391_s16, 4  ;;  %s1291_s20 = int_to_ptr.vmem [resolvable:$false] %s1290_s20 }
  0x42   : > { %s1292_s27 = scalar_lea.vmem %s1291_s20, 4096  ;;  %p1293_p8 = scmp.lt.s32.totalorder %s1541_s26, %s1291_s20 }
  0x43   : > { %p1288_p1 = pnand %p1286_p11, %p1242_p3  ;;  %p1294_p2 = scmp.lt.s32.totalorder %s1292_s27, %s1285_s8 }
  0x45   : > { %p1289_p6 = pneg %p1288_p1  ;;  %p1295_p5 = por %p1294_p2, %p1293_p8 }
  0x47   : > { %p1296_p4 = pnand %p1295_p5, %p1289_p6 }
  0x49   : > { %1299 = shalt.err (!%p1296_p4)
}
  0x4a   : > { %1181 = dma.hbm_to_vmem [thread:$0]  (!%p1490_p0), %s1533_s18, 2048, %s1541_s26, %s168_s30, %s1389_s3, %s1389_s3, %s1390_s7  }
  0x4b   : > { %197 = sbr.rel (%p1537_p12) target bundleno = 184 (0xb8), region = 28  ;;  %s1575_s4 = sand.u32 (!%p1537_p12), 1, %s1370_s10  }
  0x4c   : > { %s1004_s6 = sshll.u32 (!%p1537_p12), %s1575_s4, 9  ;;  %s200_s28 = scalar_lea.sflag (!%p1537_p12), [#allocation3], %s1575_s4 }
  0x4d   : > { %s1579_s5 = scalar_lea.vmem (!%p1537_p12), [#allocation2], %s1004_s6  ;;  %p1955_p8 = scmp.ne.s32.totalorder (!%p1537_p12), %s1949_s21, 0 }
  0x52   : > { %1353 = dma.done.wait (%p1955_p8), %s200_s28, 8192  }
  0x53   : > { %1355 = vsyncadd (%p1955_p8), %s200_s28, 4294959104  ;;  %s1005_s25 = sshll.u32 %s1575_s4, 7  ;;  %s209_s3 = scalar_lea.sflag [#allocation6], %s1575_s4 }
  0x54   : > { %s1587_s7 = scalar_lea.vmem [#allocation5], %s1005_s25 }
  0x55   : > { %1357 = dma.done.wait (%p1955_p8), %s209_s3, 2048  }
  0x56   : > { %1359 = vsyncadd (%p1955_p8), %s209_s3, 4294965248  ;;  %vm296_vm0 = vcmask 1043456   ;;  %vm330_vm1 = vcmask 424960   ;;  %v1007_v0 = vld [vmem:[%s1579_s5 + $0x80] sm:$0xf0]  ;;  %s1168_s21 = sshll.u32 %s1378_s12, 13 }
  0x57   : > { %v1009_v1 = vld [vmem:[%s1579_s5 + $0x90] sm:$0xf]  ;;  %v1008_v2 = vld [vmem:[%s1579_s5 + $0x88] sm:$0xf0]  ;;  %v297_v3 = vrot.slane %v1007_v0, 4  ;;  %s1600_s18 = scalar_lea.vmem [#allocation7], %s1004_s6  ;;  %s1883_s29 = scalar_lea.hbm %s1945_s2, %s1168_s21 }
  0x58   : > { %v298_v4 = vrot.slane %v1009_v1, 4  ;;  %v1010_v5 = vld [vmem:[%s1579_s5 + $0x98] sm:$0xf]  ;;  %v300_v6 = vrot.slane %v1008_v2, 4  ;;  %v1011_v8 = vld [vmem:[%s1579_s5 + $0xa0] sm:$0xf0] }
  0x59   : > { %v301_v7 = vrot.slane %v1010_v5, 4  ;;  %v1013_v9 = vld [vmem:[%s1579_s5 + $0xb0] sm:$0xf]  ;;  %s882_s19 = sshll.u32 %s1600_s18, 4  ;;  %v303_v11 = vrot.slane %v1011_v8, 4  ;;  %s867_s12 = scalar_lea.sflag [#allocation4], %s1575_s4  ;;  %s1887_s19 = int_to_ptr.vmem [resolvable:$true] %s882_s19 }
  0x5a   : > { %v299_v10 = vsel %vm296_vm0, %v297_v3, %v298_v4  ;;  %v304_v12 = vrot.slane %v1013_v9, 4  ;;  %v1012_v13 = vld [vmem:[%s1579_s5 + $0xa8] sm:$0xf0]  ;;  %v1014_v14 = vld [vmem:[%s1579_s5 + $0xb8] sm:$0xf]  ;;  %s1300_s15 = scalar_lea.vmem %s1887_s19, 8192 }
  0x5b   : > { %329 = vst [vmem:[%s1600_s18] sm:$0xff] %v299_v10  ;;  %v302_v15 = vsel %vm296_vm0, %v300_v6, %v301_v7  ;;  %v306_v16 = vrot.slane %v1012_v13, 4  ;;  %v307_v17 = vrot.slane %v1014_v14, 4  ;;  %v1015_v18 = vld [vmem:[%s1579_s5 + $0xc0] sm:$0xf0]  ;;  %v1017_v19 = vld [vmem:[%s1579_s5 + $0xd0] sm:$0xf]  ;;  %p1301_p0 = scmp.ne.s32.totalorder %s1887_s19, %s1300_s15 }
  0x5c   : > { %331 = vst.msk [vmem:[%s1600_s18 + $0x8] sm:$0xff] %vm330_vm1, %v302_v15  ;;  %v305_v20 = vsel %vm296_vm0, %v303_v11, %v304_v12  ;;  %v309_v21 = vrot.slane %v1015_v18, 4  ;;  %v310_v22 = vrot.slane %v1017_v19, 4  ;;  %v1016_v23 = vld [vmem:[%s1579_s5 + $0xc8] sm:$0xf0]  ;;  %p1956_p3 = scmp.ne.s32.totalorder %s1950_s22, 0 }
  0x5d   : > { %v1018_v24 = vld [vmem:[%s1579_s5 + $0xd8] sm:$0xf]  ;;  %332 = vst [vmem:[%s1600_s18 + $0x10] sm:$0xff] %v305_v20  ;;  %v308_v25 = vsel %vm296_vm0, %v306_v16, %v307_v17  ;;  %v312_v26 = vrot.slane %v1016_v23, 4  ;;  %v1019_v28 = vld [vmem:[%s1579_s5 + $0xe0] sm:$0xf0] }
  0x5e   : > { %v313_v27 = vrot.slane %v1018_v24, 4  ;;  %v1021_v29 = vld [vmem:[%s1579_s5 + $0xf0] sm:$0xf]  ;;  %333 = vst.msk [vmem:[%s1600_s18 + $0x18] sm:$0xff] %vm330_vm1, %v308_v25  ;;  %v311_v30 = vsel %vm296_vm0, %v309_v21, %v310_v22  ;;  %v315_v31 = vrot.slane %v1019_v28, 4  ;;  %p1302_p12 = pnand %p1301_p0, %p1956_p3  ;;  %s1392_s8 = smov [#allocation7]  }
  0x5f   : > { %v316_v32 = vrot.slane %v1021_v29, 4  ;;  %v1020_v33 = vld [vmem:[%s1579_s5 + $0xe8] sm:$0xf0]  ;;  %v1022_v34 = vld [vmem:[%s1579_s5 + $0xf8] sm:$0xf]  ;;  %334 = vst [vmem:[%s1600_s18 + $0x20] sm:$0xff] %v311_v30 }
  0x60   : > { %v314_v35 = vsel %vm296_vm0, %v312_v26, %v313_v27  ;;  %v318_v36 = vrot.slane %v1020_v33, 4  ;;  %v319_v37 = vrot.slane %v1022_v34, 4  ;;  %v1023_v38 = vld [vmem:[%s1579_s5 + $0x100] sm:$0xf0]  ;;  %v1025_v39 = vld [vmem:[%s1579_s5 + $0x110] sm:$0xf]  ;;  %p1303_p13 = pneg %p1302_p12 }
  0x61   : > { %335 = vst.msk [vmem:[%s1600_s18 + $0x28] sm:$0xff] %vm330_vm1, %v314_v35  ;;  %v317_v40 = vsel %vm296_vm0, %v315_v31, %v316_v32  ;;  %v354_v41 = vrot.slane %v1023_v38, 4  ;;  %v355_v42 = vrot.slane %v1025_v39, 4  ;;  %v1024_v43 = vld [vmem:[%s1579_s5 + $0x108] sm:$0xf0]  ;;  %s1304_s16 = sshll.u32 %s1392_s8, 4  ;;  %s1305_s16 = int_to_ptr.vmem [resolvable:$false] %s1304_s16 }
  0x62   : > { %v1026_v44 = vld [vmem:[%s1579_s5 + $0x118] sm:$0xf]  ;;  %336 = vst [vmem:[%s1600_s18 + $0x30] sm:$0xff] %v317_v40  ;;  %v320_v45 = vsel %vm296_vm0, %v318_v36, %v319_v37  ;;  %v357_v46 = vrot.slane %v1024_v43, 4  ;;  %v1027_v48 = vld [vmem:[%s1579_s5 + $0x120] sm:$0xf0]  ;;  %p1307_p7 = scmp.lt.s32.totalorder %s1887_s19, %s1305_s16 }
  0x63   : > { %v358_v47 = vrot.slane %v1026_v44, 4  ;;  %v1029_v49 = vld [vmem:[%s1579_s5 + $0x130] sm:$0xf]  ;;  %337 = vst.msk [vmem:[%s1600_s18 + $0x38] sm:$0xff] %vm330_vm1, %v320_v45  ;;  %v356_v50 = vsel %vm296_vm0, %v354_v41, %v355_v42  ;;  %v360_v51 = vrot.slane %v1027_v48, 4  ;;  %s1306_s20 = scalar_lea.vmem %s1305_s16, 16384 }
  0x64   : > { %v361_v52 = vrot.slane %v1029_v49, 4  ;;  %v1028_v53 = vld [vmem:[%s1579_s5 + $0x128] sm:$0xf0]  ;;  %v1030_v54 = vld [vmem:[%s1579_s5 + $0x138] sm:$0xf]  ;;  %1039 = vst [vmem:[%s1600_s18 + $0x40] sm:$0xff] %v356_v50  ;;  %p1308_p10 = scmp.lt.s32.totalorder %s1306_s20, %s1300_s15 }
  0x65   : > { %v359_v55 = vsel %vm296_vm0, %v357_v46, %v358_v47  ;;  %v363_v56 = vrot.slane %v1028_v53, 4  ;;  %v364_v57 = vrot.slane %v1030_v54, 4  ;;  %v1031_v58 = vld [vmem:[%s1579_s5 + $0x140] sm:$0xf0]  ;;  %v1033_v59 = vld [vmem:[%s1579_s5 + $0x150] sm:$0xf] }
  0x66   : > { %1040 = vst.msk [vmem:[%s1600_s18 + $0x48] sm:$0xff] %vm330_vm1, %v359_v55  ;;  %v362_v60 = vsel %vm296_vm0, %v360_v51, %v361_v52  ;;  %v366_v61 = vrot.slane %v1031_v58, 4  ;;  %v367_v62 = vrot.slane %v1033_v59, 4  ;;  %v1032_v63 = vld [vmem:[%s1579_s5 + $0x148] sm:$0xf0]  ;;  %p1309_p9 = por %p1308_p10, %p1307_p7 }
  0x67   : > { %v1034_v0 = vld [vmem:[%s1579_s5 + $0x158] sm:$0xf]  ;;  %1041 = vst [vmem:[%s1600_s18 + $0x50] sm:$0xff] %v362_v60  ;;  %v365_v1 = vsel %vm296_vm0, %v363_v56, %v364_v57  ;;  %v369_v2 = vrot.slane %v1032_v63, 4  ;;  %v1035_v4 = vld [vmem:[%s1579_s5 + $0x160] sm:$0xf0] }
  0x68   : > { %v370_v3 = vrot.slane %v1034_v0, 4  ;;  %v1037_v5 = vld [vmem:[%s1579_s5 + $0x170] sm:$0xf]  ;;  %1042 = vst.msk [vmem:[%s1600_s18 + $0x58] sm:$0xff] %vm330_vm1, %v365_v1  ;;  %v368_v6 = vsel %vm296_vm0, %v366_v61, %v367_v62  ;;  %v372_v7 = vrot.slane %v1035_v4, 4  ;;  %p1310_p11 = pnand %p1309_p9, %p1303_p13 }
  0x69   : > { %v373_v8 = vrot.slane %v1037_v5, 4  ;;  %v1036_v9 = vld [vmem:[%s1579_s5 + $0x168] sm:$0xf0]  ;;  %v1038_v10 = vld [vmem:[%s1579_s5 + $0x178] sm:$0xf]  ;;  %1043 = vst [vmem:[%s1600_s18 + $0x60] sm:$0xff] %v368_v6 }
  0x6a   : > { %v371_v11 = vsel %vm296_vm0, %v369_v2, %v370_v3  ;;  %v375_v12 = vrot.slane %v1036_v9, 4  ;;  %v376_v13 = vrot.slane %v1038_v10, 4  ;;  %v1047_v14 = vld [vmem:[%s1579_s5 + $0x90] sm:$0xf0]  ;;  %v1055_v15 = vld [vmem:[%s1579_s5 + $0x80] sm:$0xf] }
  0x6b   : > { %1044 = vst.msk [vmem:[%s1600_s18 + $0x68] sm:$0xff] %vm330_vm1, %v371_v11  ;;  %v374_v16 = vsel %vm296_vm0, %v372_v7, %v373_v8  ;;  %v419_v17 = vrot.slane %v1047_v14, 4  ;;  %v443_v18 = vrot.slane %v1055_v15, 4  ;;  %v1048_v19 = vld [vmem:[%s1579_s5 + $0x98] sm:$0xf0] }
  0x6c   : > { %v1056_v20 = vld [vmem:[%s1579_s5 + $0x88] sm:$0xf]  ;;  %1045 = vst [vmem:[%s1600_s18 + $0x70] sm:$0xff] %v374_v16  ;;  %v377_v21 = vsel %vm296_vm0, %v375_v12, %v376_v13  ;;  %v420_v22 = vrot.slane %v1048_v19, 4  ;;  %v1049_v24 = vld [vmem:[%s1579_s5 + $0xb0] sm:$0xf0] }
  0x6d   : > { %v444_v23 = vrot.slane %v1056_v20, 4  ;;  %v1057_v25 = vld [vmem:[%s1579_s5 + $0xa0] sm:$0xf]  ;;  %1046 = vst.msk [vmem:[%s1600_s18 + $0x78] sm:$0xff] %vm330_vm1, %v377_v21  ;;  %v459_v26 = vsel %vm296_vm0, %v419_v17, %v443_v18  ;;  %v421_v27 = vrot.slane %v1049_v24, 4 }
  0x6e   : > { %v445_v28 = vrot.slane %v1057_v25, 4  ;;  %v1050_v29 = vld [vmem:[%s1579_s5 + $0xb8] sm:$0xf0]  ;;  %v1058_v30 = vld [vmem:[%s1579_s5 + $0xa8] sm:$0xf]  ;;  %1079 = vst [vmem:[%s1600_s18 + $0x80] sm:$0xff] %v459_v26 }
  0x6f   : > { %v460_v31 = vsel %vm296_vm0, %v420_v22, %v444_v23  ;;  %v422_v32 = vrot.slane %v1050_v29, 4  ;;  %v446_v33 = vrot.slane %v1058_v30, 4  ;;  %v1051_v34 = vld [vmem:[%s1579_s5 + $0xd0] sm:$0xf0]  ;;  %v1059_v35 = vld [vmem:[%s1579_s5 + $0xc0] sm:$0xf] }
  0x70   : > { %1080 = vst.msk [vmem:[%s1600_s18 + $0x88] sm:$0xff] %vm330_vm1, %v460_v31  ;;  %v461_v36 = vsel %vm296_vm0, %v421_v27, %v445_v28  ;;  %v423_v37 = vrot.slane %v1051_v34, 4  ;;  %v447_v38 = vrot.slane %v1059_v35, 4  ;;  %v1052_v39 = vld [vmem:[%s1579_s5 + $0xd8] sm:$0xf0] }
  0x71   : > { %v1060_v40 = vld [vmem:[%s1579_s5 + $0xc8] sm:$0xf]  ;;  %1081 = vst [vmem:[%s1600_s18 + $0x90] sm:$0xff] %v461_v36  ;;  %v462_v41 = vsel %vm296_vm0, %v422_v32, %v446_v33  ;;  %v424_v42 = vrot.slane %v1052_v39, 4  ;;  %v1053_v44 = vld [vmem:[%s1579_s5 + $0xf0] sm:$0xf0] }
  0x72   : > { %v448_v43 = vrot.slane %v1060_v40, 4  ;;  %v1061_v45 = vld [vmem:[%s1579_s5 + $0xe0] sm:$0xf]  ;;  %1082 = vst.msk [vmem:[%s1600_s18 + $0x98] sm:$0xff] %vm330_vm1, %v462_v41  ;;  %v463_v46 = vsel %vm296_vm0, %v423_v37, %v447_v38  ;;  %v425_v47 = vrot.slane %v1053_v44, 4 }
  0x73   : > { %v449_v48 = vrot.slane %v1061_v45, 4  ;;  %v1054_v49 = vld [vmem:[%s1579_s5 + $0xf8] sm:$0xf0]  ;;  %v1062_v50 = vld [vmem:[%s1579_s5 + $0xe8] sm:$0xf]  ;;  %1083 = vst [vmem:[%s1600_s18 + $0xa0] sm:$0xff] %v463_v46 }
  0x74   : > { %v464_v51 = vsel %vm296_vm0, %v424_v42, %v448_v43  ;;  %v426_v52 = vrot.slane %v1054_v49, 4  ;;  %v450_v53 = vrot.slane %v1062_v50, 4  ;;  %v1063_v54 = vld [vmem:[%s1579_s5 + $0x110] sm:$0xf0]  ;;  %v1071_v55 = vld [vmem:[%s1579_s5 + $0x100] sm:$0xf] }
  0x75   : > { %1084 = vst.msk [vmem:[%s1600_s18 + $0xa8] sm:$0xff] %vm330_vm1, %v464_v51  ;;  %v465_v56 = vsel %vm296_vm0, %v425_v47, %v449_v48  ;;  %v491_v57 = vrot.slane %v1063_v54, 4  ;;  %v515_v58 = vrot.slane %v1071_v55, 4  ;;  %v1064_v59 = vld [vmem:[%s1579_s5 + $0x118] sm:$0xf0] }
  0x76   : > { %v1072_v60 = vld [vmem:[%s1579_s5 + $0x108] sm:$0xf]  ;;  %1085 = vst [vmem:[%s1600_s18 + $0xb0] sm:$0xff] %v465_v56  ;;  %v466_v61 = vsel %vm296_vm0, %v426_v52, %v450_v53  ;;  %v492_v62 = vrot.slane %v1064_v59, 4  ;;  %v1065_v0 = vld [vmem:[%s1579_s5 + $0x130] sm:$0xf0] }
  0x77   : > { %v516_v63 = vrot.slane %v1072_v60, 4  ;;  %v1073_v1 = vld [vmem:[%s1579_s5 + $0x120] sm:$0xf]  ;;  %1086 = vst.msk [vmem:[%s1600_s18 + $0xb8] sm:$0xff] %vm330_vm1, %v466_v61  ;;  %v531_v2 = vsel %vm296_vm0, %v491_v57, %v515_v58  ;;  %v493_v3 = vrot.slane %v1065_v0, 4 }
  0x78   : > { %v517_v4 = vrot.slane %v1073_v1, 4  ;;  %v1066_v5 = vld [vmem:[%s1579_s5 + $0x138] sm:$0xf0]  ;;  %v1074_v6 = vld [vmem:[%s1579_s5 + $0x128] sm:$0xf]  ;;  %1087 = vst [vmem:[%s1600_s18 + $0xc0] sm:$0xff] %v531_v2 }
  0x79   : > { %v532_v7 = vsel %vm296_vm0, %v492_v62, %v516_v63  ;;  %v494_v8 = vrot.slane %v1066_v5, 4  ;;  %v518_v9 = vrot.slane %v1074_v6, 4  ;;  %v1067_v10 = vld [vmem:[%s1579_s5 + $0x150] sm:$0xf0]  ;;  %v1075_v11 = vld [vmem:[%s1579_s5 + $0x140] sm:$0xf] }
  0x7a   : > { %1088 = vst.msk [vmem:[%s1600_s18 + $0xc8] sm:$0xff] %vm330_vm1, %v532_v7  ;;  %v533_v12 = vsel %vm296_vm0, %v493_v3, %v517_v4  ;;  %v495_v13 = vrot.slane %v1067_v10, 4  ;;  %v519_v14 = vrot.slane %v1075_v11, 4  ;;  %v1068_v15 = vld [vmem:[%s1579_s5 + $0x158] sm:$0xf0] }
  0x7b   : > { %v1076_v16 = vld [vmem:[%s1579_s5 + $0x148] sm:$0xf]  ;;  %1089 = vst [vmem:[%s1600_s18 + $0xd0] sm:$0xff] %v533_v12  ;;  %v534_v17 = vsel %vm296_vm0, %v494_v8, %v518_v9  ;;  %v496_v18 = vrot.slane %v1068_v15, 4  ;;  %v1069_v20 = vld [vmem:[%s1579_s5 + $0x170] sm:$0xf0] }
  0x7c   : > { %v520_v19 = vrot.slane %v1076_v16, 4  ;;  %v1077_v21 = vld [vmem:[%s1579_s5 + $0x160] sm:$0xf]  ;;  %1090 = vst.msk [vmem:[%s1600_s18 + $0xd8] sm:$0xff] %vm330_vm1, %v534_v17  ;;  %v535_v22 = vsel %vm296_vm0, %v495_v13, %v519_v14  ;;  %v497_v23 = vrot.slane %v1069_v20, 4 }
  0x7d   : > { %v521_v24 = vrot.slane %v1077_v21, 4  ;;  %v1070_v25 = vld [vmem:[%s1579_s5 + $0x178] sm:$0xf0]  ;;  %v1078_v26 = vld [vmem:[%s1579_s5 + $0x168] sm:$0xf]  ;;  %1091 = vst [vmem:[%s1600_s18 + $0xe0] sm:$0xff] %v535_v22 }
  0x7e   : > { %v536_v27 = vsel %vm296_vm0, %v496_v18, %v520_v19  ;;  %v498_v28 = vrot.slane %v1070_v25, 4  ;;  %v522_v29 = vrot.slane %v1078_v26, 4  ;;  %v1095_v30 = vld [vmem:[%s1579_s5 + $0x180] sm:$0xf0]  ;;  %v1097_v31 = vld [vmem:[%s1579_s5 + $0x190] sm:$0xf] }
  0x7f   : > { %1092 = vst.msk [vmem:[%s1600_s18 + $0xe8] sm:$0xff] %vm330_vm1, %v536_v27  ;;  %v537_v32 = vsel %vm296_vm0, %v497_v23, %v521_v24  ;;  %v606_v33 = vrot.slane %v1095_v30, 4  ;;  %v607_v34 = vrot.slane %v1097_v31, 4  ;;  %v1096_v35 = vld [vmem:[%s1579_s5 + $0x188] sm:$0xf0] }
  0x80   : > { %v1098_v36 = vld [vmem:[%s1579_s5 + $0x198] sm:$0xf]  ;;  %1093 = vst [vmem:[%s1600_s18 + $0xf0] sm:$0xff] %v537_v32  ;;  %v538_v37 = vsel %vm296_vm0, %v498_v28, %v522_v29  ;;  %v609_v38 = vrot.slane %v1096_v35, 4  ;;  %v1099_v40 = vld [vmem:[%s1579_s5 + $0x1a0] sm:$0xf0] }
  0x81   : > { %v610_v39 = vrot.slane %v1098_v36, 4  ;;  %v1101_v41 = vld [vmem:[%s1579_s5 + $0x1b0] sm:$0xf]  ;;  %1094 = vst.msk [vmem:[%s1600_s18 + $0xf8] sm:$0xff] %vm330_vm1, %v538_v37  ;;  %v608_v42 = vsel %vm296_vm0, %v606_v33, %v607_v34  ;;  %v612_v43 = vrot.slane %v1099_v40, 4 }
  0x82   : > { %v613_v44 = vrot.slane %v1101_v41, 4  ;;  %v1100_v45 = vld [vmem:[%s1579_s5 + $0x1a8] sm:$0xf0]  ;;  %v1102_v46 = vld [vmem:[%s1579_s5 + $0x1b8] sm:$0xf]  ;;  %1111 = vst [vmem:[%s1600_s18 + $0x100] sm:$0xff] %v608_v42 }
  0x83   : > { %v611_v47 = vsel %vm296_vm0, %v609_v38, %v610_v39  ;;  %v615_v48 = vrot.slane %v1100_v45, 4  ;;  %v616_v49 = vrot.slane %v1102_v46, 4  ;;  %v1103_v50 = vld [vmem:[%s1579_s5 + $0x1c0] sm:$0xf0]  ;;  %v1105_v51 = vld [vmem:[%s1579_s5 + $0x1d0] sm:$0xf] }
  0x84   : > { %1112 = vst.msk [vmem:[%s1600_s18 + $0x108] sm:$0xff] %vm330_vm1, %v611_v47  ;;  %v614_v52 = vsel %vm296_vm0, %v612_v43, %v613_v44  ;;  %v618_v53 = vrot.slane %v1103_v50, 4  ;;  %v619_v54 = vrot.slane %v1105_v51, 4  ;;  %v1104_v55 = vld [vmem:[%s1579_s5 + $0x1c8] sm:$0xf0] }
  0x85   : > { %v1106_v56 = vld [vmem:[%s1579_s5 + $0x1d8] sm:$0xf]  ;;  %1113 = vst [vmem:[%s1600_s18 + $0x110] sm:$0xff] %v614_v52  ;;  %v617_v57 = vsel %vm296_vm0, %v615_v48, %v616_v49  ;;  %v621_v58 = vrot.slane %v1104_v55, 4  ;;  %v1107_v60 = vld [vmem:[%s1579_s5 + $0x1e0] sm:$0xf0] }
  0x86   : > { %v622_v59 = vrot.slane %v1106_v56, 4  ;;  %v1109_v61 = vld [vmem:[%s1579_s5 + $0x1f0] sm:$0xf]  ;;  %1114 = vst.msk [vmem:[%s1600_s18 + $0x118] sm:$0xff] %vm330_vm1, %v617_v57  ;;  %v620_v62 = vsel %vm296_vm0, %v618_v53, %v619_v54  ;;  %v624_v63 = vrot.slane %v1107_v60, 4 }
  0x87   : > { %v625_v0 = vrot.slane %v1109_v61, 4  ;;  %v1108_v1 = vld [vmem:[%s1579_s5 + $0x1e8] sm:$0xf0]  ;;  %v1110_v2 = vld [vmem:[%s1579_s5 + $0x1f8] sm:$0xf]  ;;  %1115 = vst [vmem:[%s1600_s18 + $0x120] sm:$0xff] %v620_v62 }
  0x88   : > { %v623_v3 = vsel %vm296_vm0, %v621_v58, %v622_v59  ;;  %v627_v4 = vrot.slane %v1108_v1, 4  ;;  %v628_v5 = vrot.slane %v1110_v2, 4  ;;  %v574_v6 = vld [vmem:[%s1587_s7] sm:$0xf0]  ;;  %v576_v7 = vld [vmem:[%s1587_s7 + $0x10] sm:$0xf] }
  0x89   : > { %1116 = vst.msk [vmem:[%s1600_s18 + $0x128] sm:$0xff] %vm330_vm1, %v623_v3  ;;  %v626_v8 = vsel %vm296_vm0, %v624_v63, %v625_v0  ;;  %v663_v9 = vrot.slane %v574_v6, 4  ;;  %v664_v10 = vrot.slane %v576_v7, 4  ;;  %v575_v11 = vld [vmem:[%s1587_s7 + $0x8] sm:$0xf0] }
  0x8a   : > { %v577_v12 = vld [vmem:[%s1587_s7 + $0x18] sm:$0xf]  ;;  %1117 = vst [vmem:[%s1600_s18 + $0x130] sm:$0xff] %v626_v8  ;;  %v629_v13 = vsel %vm296_vm0, %v627_v4, %v628_v5  ;;  %v666_v14 = vrot.slane %v575_v11, 4  ;;  %v578_v16 = vld [vmem:[%s1587_s7 + $0x20] sm:$0xf0] }
  0x8b   : > { %v667_v15 = vrot.slane %v577_v12, 4  ;;  %v580_v17 = vld [vmem:[%s1587_s7 + $0x30] sm:$0xf]  ;;  %1118 = vst.msk [vmem:[%s1600_s18 + $0x138] sm:$0xff] %vm330_vm1, %v629_v13  ;;  %v665_v18 = vsel %vm296_vm0, %v663_v9, %v664_v10  ;;  %v669_v19 = vrot.slane %v578_v16, 4 }
  0x8c   : > { %v670_v20 = vrot.slane %v580_v17, 4  ;;  %v579_v21 = vld [vmem:[%s1587_s7 + $0x28] sm:$0xf0]  ;;  %v581_v22 = vld [vmem:[%s1587_s7 + $0x38] sm:$0xf]  ;;  %1119 = vst [vmem:[%s1600_s18 + $0x140] sm:$0xff] %v665_v18 }
  0x8d   : > { %v668_v23 = vsel %vm296_vm0, %v666_v14, %v667_v15  ;;  %v672_v24 = vrot.slane %v579_v21, 4  ;;  %v673_v25 = vrot.slane %v581_v22, 4  ;;  %v582_v26 = vld [vmem:[%s1587_s7 + $0x40] sm:$0xf0]  ;;  %v584_v27 = vld [vmem:[%s1587_s7 + $0x50] sm:$0xf] }
  0x8e   : > { %1120 = vst.msk [vmem:[%s1600_s18 + $0x148] sm:$0xff] %vm330_vm1, %v668_v23  ;;  %v671_v28 = vsel %vm296_vm0, %v669_v19, %v670_v20  ;;  %v675_v29 = vrot.slane %v582_v26, 4  ;;  %v676_v30 = vrot.slane %v584_v27, 4  ;;  %v583_v31 = vld [vmem:[%s1587_s7 + $0x48] sm:$0xf0] }
  0x8f   : > { %v585_v32 = vld [vmem:[%s1587_s7 + $0x58] sm:$0xf]  ;;  %1121 = vst [vmem:[%s1600_s18 + $0x150] sm:$0xff] %v671_v28  ;;  %v674_v33 = vsel %vm296_vm0, %v672_v24, %v673_v25  ;;  %v678_v34 = vrot.slane %v583_v31, 4  ;;  %v586_v36 = vld [vmem:[%s1587_s7 + $0x60] sm:$0xf0] }
  0x90   : > { %v679_v35 = vrot.slane %v585_v32, 4  ;;  %v588_v37 = vld [vmem:[%s1587_s7 + $0x70] sm:$0xf]  ;;  %1122 = vst.msk [vmem:[%s1600_s18 + $0x158] sm:$0xff] %vm330_vm1, %v674_v33  ;;  %v677_v38 = vsel %vm296_vm0, %v675_v29, %v676_v30  ;;  %v681_v39 = vrot.slane %v586_v36, 4 }
  0x91   : > { %v682_v40 = vrot.slane %v588_v37, 4  ;;  %v587_v41 = vld [vmem:[%s1587_s7 + $0x68] sm:$0xf0]  ;;  %v589_v42 = vld [vmem:[%s1587_s7 + $0x78] sm:$0xf]  ;;  %1123 = vst [vmem:[%s1600_s18 + $0x160] sm:$0xff] %v677_v38 }
  0x92   : > { %v680_v43 = vsel %vm296_vm0, %v678_v34, %v679_v35  ;;  %v684_v44 = vrot.slane %v587_v41, 4  ;;  %v685_v45 = vrot.slane %v589_v42, 4  ;;  %v1127_v46 = vld [vmem:[%s1579_s5 + $0x190] sm:$0xf0]  ;;  %v1135_v47 = vld [vmem:[%s1579_s5 + $0x180] sm:$0xf] }
  0x93   : > { %1124 = vst.msk [vmem:[%s1600_s18 + $0x168] sm:$0xff] %vm330_vm1, %v680_v43  ;;  %v683_v48 = vsel %vm296_vm0, %v681_v39, %v682_v40  ;;  %v728_v49 = vrot.slane %v1127_v46, 4  ;;  %v752_v50 = vrot.slane %v1135_v47, 4  ;;  %v1128_v51 = vld [vmem:[%s1579_s5 + $0x198] sm:$0xf0] }
  0x94   : > { %v1136_v52 = vld [vmem:[%s1579_s5 + $0x188] sm:$0xf]  ;;  %1125 = vst [vmem:[%s1600_s18 + $0x170] sm:$0xff] %v683_v48  ;;  %v686_v53 = vsel %vm296_vm0, %v684_v44, %v685_v45  ;;  %v729_v54 = vrot.slane %v1128_v51, 4  ;;  %v1129_v56 = vld [vmem:[%s1579_s5 + $0x1b0] sm:$0xf0] }
  0x95   : > { %v753_v55 = vrot.slane %v1136_v52, 4  ;;  %v1137_v57 = vld [vmem:[%s1579_s5 + $0x1a0] sm:$0xf]  ;;  %1126 = vst.msk [vmem:[%s1600_s18 + $0x178] sm:$0xff] %vm330_vm1, %v686_v53  ;;  %v768_v58 = vsel %vm296_vm0, %v728_v49, %v752_v50  ;;  %v730_v59 = vrot.slane %v1129_v56, 4 }
  0x96   : > { %v754_v60 = vrot.slane %v1137_v57, 4  ;;  %v1130_v61 = vld [vmem:[%s1579_s5 + $0x1b8] sm:$0xf0]  ;;  %v1138_v62 = vld [vmem:[%s1579_s5 + $0x1a8] sm:$0xf]  ;;  %1143 = vst [vmem:[%s1600_s18 + $0x180] sm:$0xff] %v768_v58 }
  0x97   : > { %v769_v63 = vsel %vm296_vm0, %v729_v54, %v753_v55  ;;  %v731_v0 = vrot.slane %v1130_v61, 4  ;;  %v755_v1 = vrot.slane %v1138_v62, 4  ;;  %v1131_v2 = vld [vmem:[%s1579_s5 + $0x1d0] sm:$0xf0]  ;;  %v1139_v3 = vld [vmem:[%s1579_s5 + $0x1c0] sm:$0xf] }
  0x98   : > { %1144 = vst.msk [vmem:[%s1600_s18 + $0x188] sm:$0xff] %vm330_vm1, %v769_v63  ;;  %v770_v4 = vsel %vm296_vm0, %v730_v59, %v754_v60  ;;  %v732_v5 = vrot.slane %v1131_v2, 4  ;;  %v756_v6 = vrot.slane %v1139_v3, 4  ;;  %v1132_v7 = vld [vmem:[%s1579_s5 + $0x1d8] sm:$0xf0] }
  0x99   : > { %v1140_v8 = vld [vmem:[%s1579_s5 + $0x1c8] sm:$0xf]  ;;  %1145 = vst [vmem:[%s1600_s18 + $0x190] sm:$0xff] %v770_v4  ;;  %v771_v9 = vsel %vm296_vm0, %v731_v0, %v755_v1  ;;  %v733_v10 = vrot.slane %v1132_v7, 4  ;;  %v1133_v12 = vld [vmem:[%s1579_s5 + $0x1f0] sm:$0xf0] }
  0x9a   : > { %v757_v11 = vrot.slane %v1140_v8, 4  ;;  %v1141_v13 = vld [vmem:[%s1579_s5 + $0x1e0] sm:$0xf]  ;;  %1146 = vst.msk [vmem:[%s1600_s18 + $0x198] sm:$0xff] %vm330_vm1, %v771_v9  ;;  %v772_v14 = vsel %vm296_vm0, %v732_v5, %v756_v6  ;;  %v734_v15 = vrot.slane %v1133_v12, 4 }
  0x9b   : > { %v758_v16 = vrot.slane %v1141_v13, 4  ;;  %v1134_v17 = vld [vmem:[%s1579_s5 + $0x1f8] sm:$0xf0]  ;;  %v1142_v18 = vld [vmem:[%s1579_s5 + $0x1e8] sm:$0xf]  ;;  %1147 = vst [vmem:[%s1600_s18 + $0x1a0] sm:$0xff] %v772_v14 }
  0x9c   : > { %v773_v19 = vsel %vm296_vm0, %v733_v10, %v757_v11  ;;  %v735_v20 = vrot.slane %v1134_v17, 4  ;;  %v759_v21 = vrot.slane %v1142_v18, 4  ;;  %v776_v22 = vld [vmem:[%s1587_s7 + $0x10] sm:$0xf0]  ;;  %v784_v23 = vld [vmem:[%s1587_s7] sm:$0xf] }
  0x9d   : > { %1148 = vst.msk [vmem:[%s1600_s18 + $0x1a8] sm:$0xff] %vm330_vm1, %v773_v19  ;;  %v774_v24 = vsel %vm296_vm0, %v734_v15, %v758_v16  ;;  %v800_v25 = vrot.slane %v776_v22, 4  ;;  %v824_v26 = vrot.slane %v784_v23, 4  ;;  %v777_v27 = vld [vmem:[%s1587_s7 + $0x18] sm:$0xf0] }
  0x9e   : > { %v785_v28 = vld [vmem:[%s1587_s7 + $0x8] sm:$0xf]  ;;  %1149 = vst [vmem:[%s1600_s18 + $0x1b0] sm:$0xff] %v774_v24  ;;  %v775_v29 = vsel %vm296_vm0, %v735_v20, %v759_v21  ;;  %v801_v30 = vrot.slane %v777_v27, 4  ;;  %v778_v32 = vld [vmem:[%s1587_s7 + $0x30] sm:$0xf0] }
  0x9f   : > { %v825_v31 = vrot.slane %v785_v28, 4  ;;  %v786_v33 = vld [vmem:[%s1587_s7 + $0x20] sm:$0xf]  ;;  %1150 = vst.msk [vmem:[%s1600_s18 + $0x1b8] sm:$0xff] %vm330_vm1, %v775_v29  ;;  %v840_v34 = vsel %vm296_vm0, %v800_v25, %v824_v26  ;;  %v802_v35 = vrot.slane %v778_v32, 4 }
  0xa0   : > { %v826_v36 = vrot.slane %v786_v33, 4  ;;  %v779_v37 = vld [vmem:[%s1587_s7 + $0x38] sm:$0xf0]  ;;  %v787_v38 = vld [vmem:[%s1587_s7 + $0x28] sm:$0xf]  ;;  %1151 = vst [vmem:[%s1600_s18 + $0x1c0] sm:$0xff] %v840_v34 }
  0xa1   : > { %v841_v39 = vsel %vm296_vm0, %v801_v30, %v825_v31  ;;  %v803_v40 = vrot.slane %v779_v37, 4  ;;  %v827_v41 = vrot.slane %v787_v38, 4  ;;  %v780_v42 = vld [vmem:[%s1587_s7 + $0x50] sm:$0xf0]  ;;  %v788_v43 = vld [vmem:[%s1587_s7 + $0x40] sm:$0xf] }
  0xa2   : > { %1152 = vst.msk [vmem:[%s1600_s18 + $0x1c8] sm:$0xff] %vm330_vm1, %v841_v39  ;;  %v842_v44 = vsel %vm296_vm0, %v802_v35, %v826_v36  ;;  %v804_v45 = vrot.slane %v780_v42, 4  ;;  %v828_v46 = vrot.slane %v788_v43, 4  ;;  %v781_v47 = vld [vmem:[%s1587_s7 + $0x58] sm:$0xf0] }
  0xa3   : > { %v789_v48 = vld [vmem:[%s1587_s7 + $0x48] sm:$0xf]  ;;  %1153 = vst [vmem:[%s1600_s18 + $0x1d0] sm:$0xff] %v842_v44  ;;  %v843_v49 = vsel %vm296_vm0, %v803_v40, %v827_v41  ;;  %v805_v50 = vrot.slane %v781_v47, 4  ;;  %v782_v52 = vld [vmem:[%s1587_s7 + $0x70] sm:$0xf0] }
  0xa4   : > { %v829_v51 = vrot.slane %v789_v48, 4  ;;  %v790_v53 = vld [vmem:[%s1587_s7 + $0x60] sm:$0xf]  ;;  %1154 = vst.msk [vmem:[%s1600_s18 + $0x1d8] sm:$0xff] %vm330_vm1, %v843_v49  ;;  %v844_v54 = vsel %vm296_vm0, %v804_v45, %v828_v46  ;;  %v806_v55 = vrot.slane %v782_v52, 4 }
  0xa5   : > { %v830_v56 = vrot.slane %v790_v53, 4  ;;  %v783_v57 = vld [vmem:[%s1587_s7 + $0x78] sm:$0xf0]  ;;  %v791_v58 = vld [vmem:[%s1587_s7 + $0x68] sm:$0xf]  ;;  %1155 = vst [vmem:[%s1600_s18 + $0x1e0] sm:$0xff] %v844_v54 }
  0xa6   : > { %v845_v59 = vsel %vm296_vm0, %v805_v50, %v829_v51  ;;  %v807_v60 = vrot.slane %v783_v57, 4  ;;  %v831_v61 = vrot.slane %v791_v58, 4 }
  0xa7   : > { %1156 = vst.msk [vmem:[%s1600_s18 + $0x1e8] sm:$0xff] %vm330_vm1, %v845_v59  ;;  %v846_v62 = vsel %vm296_vm0, %v806_v55, %v830_v56 }
  0xa8   : > { %1157 = vst [vmem:[%s1600_s18 + $0x1f0] sm:$0xff] %v846_v62  ;;  %v847_v63 = vsel %vm296_vm0, %v807_v60, %v831_v61 }
  0xa9   : > { %1158 = vst.msk [vmem:[%s1600_s18 + $0x1f8] sm:$0xff] %vm330_vm1, %v847_v63 }
  0xaa   : > { %1313 = shalt.err (!%p1310_p11)
}
  0xab   : > { %s1314_s27 = scalar_lea.hbm %s1883_s29, 8192  ;;  %s1318_s5 = scalar_lea.hbm %s1945_s2, 16384 }
  0xac   : > { %p1315_p1 = scmp.ne.s32.totalorder %s1883_s29, %s1314_s27  ;;  %p1319_p5 = scmp.lt.u32.totalorder %s1883_s29, %s1945_s2 }
  0xad   : > { %p1320_p4 = scmp.lt.u32.totalorder %s1318_s5, %s1314_s27  ;;  %p1322_p0 = scmp.lt.u32.totalorder %s1314_s27, %s1883_s29 }
  0xae   : > { %p1316_p6 = pnand %p1315_p1, %p1956_p3 }
  0xaf   : > { %p1321_p8 = por %p1320_p4, %p1319_p5 }
  0xb0   : > { %p1317_p2 = pneg %p1316_p6 }
  0xb1   : > { %p1323_p12 = por %p1322_p0, %p1321_p8 }
  0xb3   : > { %p1324_p13 = pnand %p1323_p12, %p1317_p2 }
  0xb5   : > { %1327 = shalt.err (!%p1324_p13)
}
  0xb6   : > { %s1393_s7 = smov 256   ;;  %s1394_s21 = smov 16  }
  0xb7   : > { %1173 = dma.vmem_to_hbm [thread:$0]  (%p1956_p3), %s1887_s19, 8192, %s1883_s29, %s867_s12, %s1393_s7, %s1393_s7, %s1394_s21  }
  0xb8 PF: > { %s897_s18 = sand.u32 1, %s1366_s9   ;;  %p1957_p7 = scmp.ne.s32.totalorder %s1951_s24, 0 }
  0xb9   : > { %p1958_p10 = scmp.ge.s32.totalorder %s1386_s14, 2  ;;  %s898_s26 = scalar_lea.sflag [#allocation4], %s897_s18 }
  0xbb   : > { %p1183_p9 = pnand %p1958_p10, %p1957_p7 }
  0xbd   : > { %1361 = dma.done.wait (!%p1183_p9), %s898_s26, 8192  }
  0xbe   : > { %1363 = vsyncadd (!%p1183_p9), %s898_s26, 4294959104  ;;  %s21_s14 = sadd.s32 1, %s1386_s14   ;;  %s1959_s9 = smov %s1370_s10 }
  0xbf   : > { %p18_p11 = scmp.ge.s32.totalorder %s21_s14, 4   ;;  %s1960_s10 = smov %s1374_s11 }
  0xc0   : > { %s1961_s11 = smov %s1466_s23  ;;  %s1962_s12 = smov %s1382_s13 }
  0xc1   : > { %s1963_s13 = smov %s1965_s17  ;;  %20 = sbr.rel (!%p18_p11) target bundleno = 8 (0x8), region = 96 }
  0xc8   :  { %903 = vsyncpa [#allocation3], 1 }
  0xc9   :  { %905 = vsyncpa [#allocation3 + $0x1], 1 }
  0xca   :  { %906 = vsyncpa [#allocation6], 1 }
  0xcb   :  { %908 = vsyncpa [#allocation6 + $0x1], 1 }
  0xcc   :  { %909 = vsyncpa [#allocation4], 1 }
  0xcd   :  { %911 = vsyncpa [#allocation4 + $0x1], 1 }

</bundles_post_ra>
